<compile_context>
chip_gen: v7x
topology: tpu7x:2x2x1
jax: 0.10.0
libtpu: 0.0.40
codegen_flags: <defaults>
</compile_context>

<pallas_src>
import functools

import jax
import jax.numpy as jnp
import numpy as np
from jax import lax
from jax.experimental import pallas as pl
from jax.experimental.pallas import tpu as pltpu


def _generation_params():
    """(vmem_limit_bytes, per-buffer block target bytes) per TPU generation."""
    try:
        cap = int(pltpu.get_tpu_info().vmem_capacity_bytes)
    except Exception:
        cap = 64 * 1024 * 1024                        # conservative (v7x-class)
    if cap > 96 * 1024 * 1024:                        # v5e / v6e: 128 MiB physical
        return 64 * 1024 * 1024, 8 * 1024 * 1024
    return 48 * 1024 * 1024, 5 * 1024 * 1024          # v7x: 64 MiB physical


_VMEM_LIMIT, _BLOCK_TARGET = _generation_params()


# ---------------------------------------------------------------------------
# shared per-block math: unbiased std over the group axis (single pass)
# ---------------------------------------------------------------------------
def _block_group_std(x_ref, k, *, group, inv_g, inv_gm1, ncols, tc, nk):
    """x_ref block (G, R, tc) -> per-column std (R, tc); ragged tail zeroed."""
    x0 = x_ref[0].astype(jnp.float32)                 # (R, tc)
    s, ss = x0, x0 * x0
    for g in range(1, group):                         # static unroll, G is small
        xg = x_ref[g].astype(jnp.float32)
        s = s + xg
        ss = ss + xg * xg
    var = (ss - s * s * inv_g) * inv_gm1              # unbiased (correction = 1)
    std = jnp.sqrt(jnp.maximum(var, 0.0) + 1e-8)
    if nk * tc != ncols:                              # static: mask tail columns
        col = k * tc + lax.broadcasted_iota(jnp.int32, std.shape, std.ndim - 1)
        std = jnp.where(col < ncols, std, 0.0)
    return std


# ---------------------------------------------------------------------------
# Kernel 1 (fused path): copy X into out[:, :C] and accumulate per-column std.
# ---------------------------------------------------------------------------
def _fused_reduce_copy_kernel(x_ref, out_ref, std_ref, acc_ref, *,
                              group, inv_g, inv_gm1, inv_n, ncols, tc, nk):
    k = pl.program_id(0)

    @pl.when(k == 0)
    def _init():
        acc_ref[...] = jnp.zeros_like(acc_ref)

    # fused X copy; any tail-block garbage lands in the std plane and is
    # overwritten by kernel 2.
    out_ref[...] = x_ref[...]

    acc_ref[...] += _block_group_std(x_ref, k, group=group, inv_g=inv_g,
                                     inv_gm1=inv_gm1, ncols=ncols, tc=tc, nk=nk)

    @pl.when(k == nk - 1)
    def _finalize():
        std_ref[0, 0] = jnp.sum(acc_ref[...]) * inv_n


# ---------------------------------------------------------------------------
# Kernel 2 (fused path): fill the std plane in place (output aliases input 1).
# ---------------------------------------------------------------------------
def _plane_fill_kernel(std_ref, full_ref, out_ref):
    del full_ref                                      # aliased buffer, untouched
    out_ref[...] = jnp.full(out_ref.shape, std_ref[0, 0], dtype=out_ref.dtype)


# ---------------------------------------------------------------------------
# Fallback kernels (C*H*W not a multiple of 128): tiled reduce + concat.
# ---------------------------------------------------------------------------
def _std_reduce_kernel(x_ref, std_ref, acc_ref, *,
                       group, inv_g, inv_gm1, inv_n, ncols, tc, nk):
    k = pl.program_id(0)

    @pl.when(k == 0)
    def _init():
        acc_ref[...] = jnp.zeros_like(acc_ref)

    acc_ref[...] += _block_group_std(x_ref, k, group=group, inv_g=inv_g,
                                     inv_gm1=inv_gm1, ncols=ncols, tc=tc, nk=nk)

    @pl.when(k == nk - 1)
    def _finalize():
        std_ref[0, 0] = jnp.sum(acc_ref[...]) * inv_n


def _concat_kernel(std_ref, x_ref, out_ref, *, chw):
    s = std_ref[0, 0]
    out_ref[:, :chw] = x_ref[...]
    rows, cols = out_ref.shape
    out_ref[:, chw:] = jnp.full((rows, cols - chw), s, dtype=out_ref.dtype)


# ---------------------------------------------------------------------------
# Wrappers
# ---------------------------------------------------------------------------
def _fill_std_plane(out4, std, c_index):
    B, C1, H, W = out4.shape
    hw_bytes = H * W * out4.dtype.itemsize
    bt = max(1, min(B, _BLOCK_TARGET // max(hw_bytes, 1)))
    nb = -(-B // bt)

    return pl.pallas_call(
        _plane_fill_kernel,
        out_shape=jax.ShapeDtypeStruct((B, C1, H, W), out4.dtype),
        grid_spec=pltpu.PrefetchScalarGridSpec(
            num_scalar_prefetch=0,
            grid=(nb,),
            in_specs=[pl.BlockSpec(memory_space=pltpu.MemorySpace.SMEM),
                      pl.BlockSpec(memory_space=pl.ANY)],
            out_specs=pl.BlockSpec((bt, 1, H, W), lambda b: (b, c_index, 0, 0)),
        ),
        input_output_aliases={1: 0},                  # X channels already in place
        compiler_params=pltpu.CompilerParams(
            dimension_semantics=("arbitrary",),
            vmem_limit_bytes=_VMEM_LIMIT),
    )(std, out4)


def _fused_forward(x, group):
    B, C, H, W = x.shape
    bg = B // group
    chw, hw = C * H * W, H * W
    n_cols = bg * chw                                 # N of grouped (G, N)

    # column tile (multiple of 128); one (G, B/G, tc) block ~ per-buffer target
    # budgeted at f32 width so the in-kernel f32 temporaries also fit.
    t_cap = max(128, (_BLOCK_TARGET // (B * 4)) // 128 * 128)
    tc = min(t_cap, chw)
    nk = -(-chw // tc)

    x3 = x.reshape(group, bg, chw)                    # free row-major view

    kernel = functools.partial(
        _fused_reduce_copy_kernel, group=group, inv_g=1.0 / group,
        inv_gm1=1.0 / (group - 1), inv_n=1.0 / n_cols, ncols=chw, tc=tc, nk=nk)

    out3, std = pl.pallas_call(
        kernel,
        out_shape=(jax.ShapeDtypeStruct((group, bg, chw + hw), x.dtype),
                   jax.ShapeDtypeStruct((1, 1), jnp.float32)),
        grid_spec=pltpu.PrefetchScalarGridSpec(
            num_scalar_prefetch=0,
            grid=(nk,),
            in_specs=[pl.BlockSpec((group, bg, tc), lambda k: (0, 0, k))],
            out_specs=[pl.BlockSpec((group, bg, tc), lambda k: (0, 0, k)),
                       pl.BlockSpec(memory_space=pltpu.MemorySpace.SMEM)],
            scratch_shapes=[pltpu.VMEM((bg, tc), jnp.float32)],
        ),
        compiler_params=pltpu.CompilerParams(
            dimension_semantics=("arbitrary",),
            vmem_limit_bytes=_VMEM_LIMIT),
    )(x3)

    out4 = out3.reshape(B, C + 1, H, W)               # free view back to NCHW
    return _fill_std_plane(out4, std, C)


def _fallback_forward(x, group):
    # TODO(synk): generic-shape path (C*H*W not a multiple of 128); X is read
    # twice (reduce pass + concat pass) instead of the fused single read.
    B, C, H, W = x.shape
    chw, hw = C * H * W, H * W
    n = (B * chw) // group

    grouped = x.reshape(group, 1, n)

    t_cap = max(128, (_BLOCK_TARGET // (group * 4)) // 128 * 128)
    if t_cap >= n:
        tc, nk = n, 1
    else:
        tc, nk = t_cap, -(-n // t_cap)

    kernel = functools.partial(
        _std_reduce_kernel, group=group, inv_g=1.0 / group,
        inv_gm1=1.0 / (group - 1), inv_n=1.0 / n, ncols=n, tc=tc, nk=nk)

    std = pl.pallas_call(
        kernel,
        out_shape=jax.ShapeDtypeStruct((1, 1), jnp.float32),
        grid_spec=pltpu.PrefetchScalarGridSpec(
            num_scalar_prefetch=0,
            grid=(nk,),
            in_specs=[pl.BlockSpec((group, 1, tc), lambda k: (0, 0, k))],
            out_specs=pl.BlockSpec(memory_space=pltpu.MemorySpace.SMEM),
            scratch_shapes=[pltpu.VMEM((1, tc), jnp.float32)],
        ),
        compiler_params=pltpu.CompilerParams(
            dimension_semantics=("arbitrary",),
            vmem_limit_bytes=_VMEM_LIMIT),
    )(grouped)

    # concat pass (correctness-first for unaligned rows)
    xf = x.reshape(B, chw)
    row_bytes = (chw + hw) * x.dtype.itemsize
    sub = {4: 8, 2: 16, 1: 32}.get(x.dtype.itemsize, 8)   # dtype-aware sublane tile
    bt = _BLOCK_TARGET // max(row_bytes, 1)
    bt = B if bt >= B else max(sub, (bt // sub) * sub)
    nb = -(-B // bt)

    out_flat = pl.pallas_call(
        functools.partial(_concat_kernel, chw=chw),
        out_shape=jax.ShapeDtypeStruct((B, chw + hw), x.dtype),
        grid_spec=pltpu.PrefetchScalarGridSpec(
            num_scalar_prefetch=0,
            grid=(nb,),
            in_specs=[pl.BlockSpec(memory_space=pltpu.MemorySpace.SMEM),
                      pl.BlockSpec((bt, chw), lambda b: (b, 0))],
            out_specs=pl.BlockSpec((bt, chw + hw), lambda b: (b, 0)),
        ),
        compiler_params=pltpu.CompilerParams(
            dimension_semantics=("arbitrary",),
            vmem_limit_bytes=_VMEM_LIMIT),
    )(std, xf)

    return out_flat.reshape(B, C + 1, H, W)


# ---------------------------------------------------------------------------
# Public wrapper: equivalent of BatchCreator(group_size).forward(X)
# ---------------------------------------------------------------------------
def batch_creator(x, group_size: int = 4):
    B, C, H, W = x.shape
    assert B % group_size == 0
    assert group_size > 1, "unbiased variance undefined for group_size == 1"
    if (C * H * W) % 128 == 0:
        return _fused_forward(x, group_size)
    return _fallback_forward(x, group_size)


# pure-JAX reference for verification
def _reference(x, group_size=4):
    grouped = x.reshape(group_size, -1)
    var = jnp.var(grouped, axis=0, ddof=1)            # torch.var default: unbiased
    std = jnp.mean(jnp.sqrt(var + 1e-8))
    b, _, h, w = x.shape
    plane = jnp.broadcast_to(std, (b, 1, h, w)).astype(x.dtype)
    return jnp.concatenate([x, plane], axis=1)


if __name__ == "__main__":
    key = jax.random.PRNGKey(0)
    B, C, H, W = 8, 4, 16, 16                         # B divisible by group_size=4
    x = jax.random.normal(key, (B, C, H, W), dtype=jnp.float32)

    fn = jax.jit(functools.partial(batch_creator, group_size=4))
    out = jax.block_until_ready(fn(x))

    ref = _reference(x, group_size=4)
    assert out.shape == (B, C + 1, H, W), out.shape
    np.testing.assert_allclose(np.asarray(out), np.asarray(ref),
                               rtol=1e-5, atol=1e-5)
    print("KERNEL_OK")
</pallas_src>

<mosaic_0001>
module attributes {stable_mosaic.version = 11 : i64} {
  func.func @_plane_fill_kernel(%arg0: i32, %arg1: memref<1x1xf32, #tpu.memory_space<smem>>, %arg2: memref<8x5x16x16xf32, #tpu.memory_space<any>>, %arg3: memref<8x1x16x16xf32, #tpu.memory_space<vmem>>) attributes {dimension_semantics = [#tpu.dimension_semantics<arbitrary>], iteration_bounds = array<i64: 1>, scalar_prefetch = 0 : i64, scratch_operands = 0 : i64, tpu.core_type = #tpu.core_type<tc>, window_params = [{transform_indices = @transform_0, window_bounds = array<i64: 1, 1>}, {}, {transform_indices = @transform_2, window_bounds = array<i64: 8, 1, 16, 16>}]} {
    %c0 = arith.constant 0 : index
    %c0_0 = arith.constant 0 : index
    %0 = memref.load %arg1[%c0, %c0_0] : memref<1x1xf32, #tpu.memory_space<smem>>
    %1 = vector.broadcast %0 : f32 to vector<8x1x16x16xf32>
    %c0_1 = arith.constant 0 : index
    %c0_2 = arith.constant 0 : index
    %c0_3 = arith.constant 0 : index
    %c0_4 = arith.constant 0 : index
    %2 = vector.load %arg3[%c0_1, %c0_2, %c0_3, %c0_4] : memref<8x1x16x16xf32, #tpu.memory_space<vmem>>, vector<8x1x16x16xf32>
    tpu.vector_store %arg3[%c0_1, %c0_2, %c0_3, %c0_4], %1 {strides = array<i32>} : memref<8x1x16x16xf32, #tpu.memory_space<vmem>>, vector<8x1x16x16xf32>,
    return
  }
  func.func @transform_0(%arg0: i32) -> (i32, i32) {
    %c0_i32 = arith.constant 0 : i32
    %c0_i32_0 = arith.constant 0 : i32
    %c0_i32_1 = arith.constant 0 : i32
    return %c0_i32, %c0_i32_0 : i32, i32
  }
  func.func @transform_2(%arg0: i32) -> (i32, i32, i32, i32) {
    %c4_i32 = arith.constant 4 : i32
    %c0_i32 = arith.constant 0 : i32
    %c0_i32_0 = arith.constant 0 : i32
    %c0_i32_1 = arith.constant 0 : i32
    return %arg0, %c4_i32, %c0_i32, %c0_i32_0 : i32, i32, i32, i32
  }
}

module attributes {stable_mosaic.version = 11 : i64} {
  func.func @_fused_reduce_copy_kernel(%arg0: i32, %arg1: memref<4x2x1024xf32, #tpu.memory_space<vmem>>, %arg2: memref<4x2x1024xf32, #tpu.memory_space<vmem>>, %arg3: memref<1x1xf32, #tpu.memory_space<smem>>, %arg4: memref<2x1024xf32, #tpu.memory_space<vmem>>) attributes {dimension_semantics = [#tpu.dimension_semantics<arbitrary>], iteration_bounds = array<i64: 1>, scalar_prefetch = 0 : i64, scratch_operands = 1 : i64, tpu.core_type = #tpu.core_type<tc>, window_params = [{transform_indices = @transform_0, window_bounds = array<i64: 4, 2, 1024>}, {transform_indices = @transform_1, window_bounds = array<i64: 4, 2, 1024>}, {transform_indices = @transform_2, window_bounds = array<i64: 1, 1>}]} {
    %c0_i32 = arith.constant 0 : i32
    %0 = arith.cmpi eq, %arg0, %c0_i32 : i32
    %1 = arith.extui %0 : i1 to i32
    %c0_i32_0 = arith.constant 0 : i32
    %2 = arith.cmpi ne, %1, %c0_i32_0 : i32
    scf.if %2 {
      %cst_24 = arith.constant 0.000000e+00 : f32
      %40 = vector.broadcast %cst_24 : f32 to vector<2x1024xf32>
      %c0_25 = arith.constant 0 : index
      %c0_26 = arith.constant 0 : index
      %41 = vector.load %arg4[%c0_25, %c0_26] : memref<2x1024xf32, #tpu.memory_space<vmem>>, vector<2x1024xf32>
      tpu.vector_store %arg4[%c0_25, %c0_26], %40 {strides = array<i32>} : memref<2x1024xf32, #tpu.memory_space<vmem>>, vector<2x1024xf32>,
    } else {
    }
    %c0 = arith.constant 0 : index
    %c0_1 = arith.constant 0 : index
    %c0_2 = arith.constant 0 : index
    %3 = vector.load %arg1[%c0, %c0_1, %c0_2] : memref<4x2x1024xf32, #tpu.memory_space<vmem>>, vector<4x2x1024xf32>
    %c0_3 = arith.constant 0 : index
    %c0_4 = arith.constant 0 : index
    %c0_5 = arith.constant 0 : index
    %4 = vector.load %arg2[%c0_3, %c0_4, %c0_5] : memref<4x2x1024xf32, #tpu.memory_space<vmem>>, vector<4x2x1024xf32>
    tpu.vector_store %arg2[%c0_3, %c0_4, %c0_5], %3 {strides = array<i32>} : memref<4x2x1024xf32, #tpu.memory_space<vmem>>, vector<4x2x1024xf32>,
    %c0_6 = arith.constant 0 : index
    %c0_7 = arith.constant 0 : index
    %5 = vector.load %arg4[%c0_6, %c0_7] : memref<2x1024xf32, #tpu.memory_space<vmem>>, vector<2x1024xf32>
    %c0_8 = arith.constant 0 : index
    %c0_9 = arith.constant 0 : index
    %c0_10 = arith.constant 0 : index
    %6 = vector.load %arg1[%c0_8, %c0_9, %c0_10] : memref<4x2x1024xf32, #tpu.memory_space<vmem>>, vector<1x2x1024xf32>
    %7 = vector.shape_cast %6 : vector<1x2x1024xf32> to vector<2x1024xf32>
    %8 = arith.mulf %7, %7 : vector<2x1024xf32>
    %c1 = arith.constant 1 : index
    %c0_11 = arith.constant 0 : index
    %c0_12 = arith.constant 0 : index
    %9 = vector.load %arg1[%c1, %c0_11, %c0_12] : memref<4x2x1024xf32, #tpu.memory_space<vmem>>, vector<1x2x1024xf32>
    %10 = vector.shape_cast %9 : vector<1x2x1024xf32> to vector<2x1024xf32>
    %11 = arith.addf %7, %10 : vector<2x1024xf32>
    %12 = arith.mulf %10, %10 : vector<2x1024xf32>
    %13 = arith.addf %8, %12 : vector<2x1024xf32>
    %c2 = arith.constant 2 : index
    %c0_13 = arith.constant 0 : index
    %c0_14 = arith.constant 0 : index
    %14 = vector.load %arg1[%c2, %c0_13, %c0_14] : memref<4x2x1024xf32, #tpu.memory_space<vmem>>, vector<1x2x1024xf32>
    %15 = vector.shape_cast %14 : vector<1x2x1024xf32> to vector<2x1024xf32>
    %16 = arith.addf %11, %15 : vector<2x1024xf32>
    %17 = arith.mulf %15, %15 : vector<2x1024xf32>
    %18 = arith.addf %13, %17 : vector<2x1024xf32>
    %c3 = arith.constant 3 : index
    %c0_15 = arith.constant 0 : index
    %c0_16 = arith.constant 0 : index
    %19 = vector.load %arg1[%c3, %c0_15, %c0_16] : memref<4x2x1024xf32, #tpu.memory_space<vmem>>, vector<1x2x1024xf32>
    %20 = vector.shape_cast %19 : vector<1x2x1024xf32> to vector<2x1024xf32>
    %21 = arith.addf %16, %20 : vector<2x1024xf32>
    %22 = arith.mulf %20, %20 : vector<2x1024xf32>
    %23 = arith.addf %18, %22 : vector<2x1024xf32>
    %24 = arith.mulf %21, %21 : vector<2x1024xf32>
    %cst = arith.constant 2.500000e-01 : f32
    %25 = vector.broadcast %cst : f32 to vector<2x1024xf32>
    %26 = arith.mulf %24, %25 : vector<2x1024xf32>
    %27 = arith.subf %23, %26 : vector<2x1024xf32>
    %cst_17 = arith.constant 0.333333343 : f32
    %28 = vector.broadcast %cst_17 : f32 to vector<2x1024xf32>
    %29 = arith.mulf %27, %28 : vector<2x1024xf32>
    %cst_18 = arith.constant 0.000000e+00 : f32
    %30 = vector.broadcast %cst_18 : f32 to vector<2x1024xf32>
    %31 = arith.maximumf %29, %30 : vector<2x1024xf32>
    %cst_19 = arith.constant 9.99999993E-9 : f32
    %32 = vector.broadcast %cst_19 : f32 to vector<2x1024xf32>
    %33 = arith.addf %31, %32 : vector<2x1024xf32>
    %34 = math.sqrt %33 : vector<2x1024xf32>
    %35 = arith.addf %5, %34 : vector<2x1024xf32>
    %c0_20 = arith.constant 0 : index
    %c0_21 = arith.constant 0 : index
    %36 = vector.load %arg4[%c0_20, %c0_21] : memref<2x1024xf32, #tpu.memory_space<vmem>>, vector<2x1024xf32>
    tpu.vector_store %arg4[%c0_20, %c0_21], %35 {strides = array<i32>} : memref<2x1024xf32, #tpu.memory_space<vmem>>, vector<2x1024xf32>,
    %c0_i32_22 = arith.constant 0 : i32
    %37 = arith.cmpi eq, %arg0, %c0_i32_22 : i32
    %38 = arith.extui %37 : i1 to i32
    %c0_i32_23 = arith.constant 0 : i32
    %39 = arith.cmpi ne, %38, %c0_i32_23 : i32
    scf.if %39 {
      %c0_24 = arith.constant 0 : index
      %c0_25 = arith.constant 0 : index
      %40 = vector.load %arg4[%c0_24, %c0_25] : memref<2x1024xf32, #tpu.memory_space<vmem>>, vector<2x1024xf32>
      %41 = vector.shape_cast %40 : vector<2x1024xf32> to vector<1x2x1024xf32>
      %cst_26 = arith.constant dense<0.000000e+00> : vector<1xf32>
      %42 = vector.multi_reduction <add>, %41, %cst_26 [1, 2] : vector<1x2x1024xf32> to vector<1xf32>
      %43 = vector.shape_cast %42 : vector<1xf32> to vector<1x1x1xf32>
      %44 = vector.extract %43[0, 0, 0] : f32 from vector<1x1x1xf32>
      %cst_27 = arith.constant 4.8828125E-4 : f32
      %45 = arith.mulf %44, %cst_27 : f32
      %c0_28 = arith.constant 0 : index
      %c0_29 = arith.constant 0 : index
      %46 = memref.load %arg3[%c0_28, %c0_29] : memref<1x1xf32, #tpu.memory_space<smem>>
      memref.store %45, %arg3[%c0_28, %c0_29] : memref<1x1xf32, #tpu.memory_space<smem>>
    } else {
    }
    return
  }
  func.func @transform_0(%arg0: i32) -> (i32, i32, i32) {
    %c0_i32 = arith.constant 0 : i32
    %c0_i32_0 = arith.constant 0 : i32
    %c0_i32_1 = arith.constant 0 : i32
    return %c0_i32, %c0_i32_0, %arg0 : i32, i32, i32
  }
  func.func @transform_1(%arg0: i32) -> (i32, i32, i32) {
    %c0_i32 = arith.constant 0 : i32
    %c0_i32_0 = arith.constant 0 : i32
    %c0_i32_1 = arith.constant 0 : i32
    return %c0_i32, %c0_i32_0, %arg0 : i32, i32, i32
  }
  func.func @transform_2(%arg0: i32) -> (i32, i32) {
    %c0_i32 = arith.constant 0 : i32
    %c0_i32_0 = arith.constant 0 : i32
    %c0_i32_1 = arith.constant 0 : i32
    return %c0_i32, %c0_i32_0 : i32, i32
  }
}

</mosaic_0001>

<bundles_post_ra>
// kernel: batch_creator.3
= control target key start
LH: loop header
LB: loop body
LE: loop exit
PB: predicated region body
PF: predicated region fallthrough
CT: control target
= control target key end

     0   :  { %8 = vsyncpa [#allocation4], 0  ;;  %vm13_vm0 = vcmask 130048   ;;  %s133_s0 = inlined_call_operand.<no memory space> [shape: f32[1,1], index: 0, kind: input, shape index: {}]   ;;  %s134_s1 = inlined_call_operand.hbm [shape: f32[8,5,16,16], index: 1, kind: input, shape index: {}, may-alias: {1,2}]   ;;  %s135_s2 = inlined_call_operand.hbm [shape: f32[8,5,16,16], index: 2, kind: output, shape index: {}, may-alias: {1,2}]  }
   0x1   :  { %v12_v0 = vstv %s133_s0 }
   0x2   :  { %14 = vst.msk [vmem:[#allocation3] sm:$0xff] %vm13_vm0, %v12_v0  ;;  %15 = vst.msk [vmem:[#allocation3 + $0x8] sm:$0xff] %vm13_vm0, %v12_v0 }
   0x3   :  { %16 = vst.msk [vmem:[#allocation3 + $0x10] sm:$0xff] %vm13_vm0, %v12_v0  ;;  %17 = vst.msk [vmem:[#allocation3 + $0x18] sm:$0xff] %vm13_vm0, %v12_v0 }
   0x4   :  { %18 = vst.msk [vmem:[#allocation3 + $0x20] sm:$0xff] %vm13_vm0, %v12_v0  ;;  %19 = vst.msk [vmem:[#allocation3 + $0x28] sm:$0xff] %vm13_vm0, %v12_v0 }
   0x5   :  { %20 = vst.msk [vmem:[#allocation3 + $0x30] sm:$0xff] %vm13_vm0, %v12_v0  ;;  %21 = vst.msk [vmem:[#allocation3 + $0x38] sm:$0xff] %vm13_vm0, %v12_v0 }
   0x6   :  { %22 = vst.msk [vmem:[#allocation3 + $0x40] sm:$0xff] %vm13_vm0, %v12_v0  ;;  %23 = vst.msk [vmem:[#allocation3 + $0x48] sm:$0xff] %vm13_vm0, %v12_v0 }
   0x7   :  { %24 = vst.msk [vmem:[#allocation3 + $0x50] sm:$0xff] %vm13_vm0, %v12_v0  ;;  %25 = vst.msk [vmem:[#allocation3 + $0x58] sm:$0xff] %vm13_vm0, %v12_v0 }
   0x8   :  { %26 = vst.msk [vmem:[#allocation3 + $0x60] sm:$0xff] %vm13_vm0, %v12_v0  ;;  %27 = vst.msk [vmem:[#allocation3 + $0x68] sm:$0xff] %vm13_vm0, %v12_v0 }
   0x9   :  { %28 = vst.msk [vmem:[#allocation3 + $0x70] sm:$0xff] %vm13_vm0, %v12_v0  ;;  %29 = vst.msk [vmem:[#allocation3 + $0x78] sm:$0xff] %vm13_vm0, %v12_v0 }
   0xa   :  { %s35_s11 = scalar_lea.hbm %s135_s2, 1024  ;;  %s87_s12 = smov [#allocation3]  }
   0xb   :  { %s52_s13 = sshll.u32 %s87_s12, 4  ;;  %s88_s14 = smov 256   ;;  %s53_s13 = int_to_ptr.vmem [resolvable:$true] %s52_s13 }
   0xc   :  { %59 = sst [smem:[#allocation6]] %s88_s14  ;;  %s89_s15 = smov 1280  }
   0xd   :  { %61 = sst [smem:[#allocation6 + $0x1]] %s89_s15  ;;  %s90_s16 = smov 2  }
   0xe   :  { %63 = sst [smem:[#allocation6 + $0x2]] %s90_s16  ;;  %s91_s17 = smov 128  }
   0xf   :  { %65 = sst [smem:[#allocation6 + $0x3]] %s91_s17  ;;  %s92_s18 = smov 8  }
  0x10   :  { %67 = sst [smem:[#allocation6 + $0x4]] %s91_s17  ;;  %s93_s19 = smov [#allocation4]  }
  0x11   :  { %69 = sst [smem:[#allocation6 + $0x5]] %s92_s18  ;;  %s94_s20 = smov [#allocation5]  }
  0x12   :  { %s95_s21 = smov 0  }
  0x13   :  { %71 = dma.general %s53_s13, 2048, %s35_s11, %s93_s19, %s94_s20, [#allocation6], %s95_s21, 0  }
  0x14   :  { %85 = dma.done.wait [#allocation4], 2048  }
  0x15   :  { %86 = vsyncadd [#allocation4], 4294965248 }
  0x16   :  { %75 = vsyncpa [#allocation4], 1 }

// kernel: batch_creator.2
= control target key start
LH: loop header
LB: loop body
LE: loop exit
PB: predicated region body
PF: predicated region fallthrough
CT: control target
= control target key end

     0   :  { %s336_s0 = inlined_call_operand.vmem [shape: f32[4,2,1024], index: 0, kind: input, shape index: {}]   ;;  %s337_s1 = inlined_call_operand.vmem [shape: f32[4,2,1280], index: 1, kind: output, shape index: {0}]   ;;  %s338_s2 = inlined_call_operand.hbm [shape: f32[1,1], index: 2, kind: output, shape index: {1}]  }
   0x1   :  { %v17_v0 = vld [vmem:[%s336_s0] sm:$0xff]  ;;  %v18_v1 = vld [vmem:[%s336_s0 + $0x8] sm:$0xff]  ;;  %v19_v2 = vld [vmem:[%s336_s0 + $0x10] sm:$0xff] }
   0x2   :  { %v20_v3 = vld [vmem:[%s336_s0 + $0x18] sm:$0xff]  ;;  %v21_v4 = vld [vmem:[%s336_s0 + $0x20] sm:$0xff]  ;;  %v22_v5 = vld [vmem:[%s336_s0 + $0x28] sm:$0xff]  ;;  %v37_v6 = vmul.f32 %v17_v0, %v17_v0  ;;  %v38_v7 = vmul.f32 %v18_v1, %v18_v1  ;;  %v42_v8 = vadd.f32 %v19_v2, %v17_v0  ;;  %v44_v9 = vmul.f32 %v19_v2, %v19_v2  ;;  %188 = vst [vmem:[%s337_s1] sm:$0xff] %v17_v0 }
   0x3   :  { %190 = vst [vmem:[%s337_s1 + $0x8] sm:$0xff] %v18_v1  ;;  %192 = vst [vmem:[%s337_s1 + $0x14] sm:$0xff] %v19_v2  ;;  %v23_v10 = vld [vmem:[%s336_s0 + $0x30] sm:$0xff]  ;;  %v24_v11 = vld [vmem:[%s336_s0 + $0x38] sm:$0xff]  ;;  %v43_v12 = vadd.f32 %v20_v3, %v18_v1  ;;  %v45_v13 = vmul.f32 %v20_v3, %v20_v3  ;;  %v53_v14 = vmul.f32 %v21_v4, %v21_v4 }
   0x4   :  { %v54_v15 = vmul.f32 %v22_v5, %v22_v5  ;;  %194 = vst [vmem:[%s337_s1 + $0x1c] sm:$0xff] %v20_v3  ;;  %196 = vst [vmem:[%s337_s1 + $0x28] sm:$0xff] %v21_v4 }
   0x5   :  { %198 = vst [vmem:[%s337_s1 + $0x30] sm:$0xff] %v22_v5 }
   0x6   :  { %8 = vsyncpa [#allocation5], 0  ;;  %v46_v16 = vadd.f32 %v44_v9, %v37_v6  ;;  %v51_v17 = vadd.f32 %v42_v8, %v21_v4  ;;  %v62_v18 = vmul.f32 %v23_v10, %v23_v10  ;;  %200 = vst [vmem:[%s337_s1 + $0x3c] sm:$0xff] %v23_v10  ;;  %v47_v19 = vadd.f32 %v45_v13, %v38_v7  ;;  %s239_s15 = scalar_lea.hbm %s338_s2, 16 }
   0x7   :  { %202 = vst [vmem:[%s337_s1 + $0x44] sm:$0xff] %v24_v11  ;;  %v52_v20 = vadd.f32 %v43_v12, %v22_v5  ;;  %v63_v21 = vmul.f32 %v24_v11, %v24_v11  ;;  %v251_v40 = vmov 1983009808   ;;  %v107_v42 = vlaneseq  ;;  %p240_p0 = scmp.ne.s32.totalorder %s338_s2, %s239_s15  ;;  %p243_p1 = scmp.lt.u32.totalorder %s239_s15, %s338_s2 }
   0x8   :  { %v55_v22 = vadd.f32 %v53_v14, %v46_v16  ;;  %v60_v23 = vadd.f32 %v51_v17, %v23_v10  ;;  %v56_v24 = vadd.f32 %v54_v15, %v47_v19  ;;  %v105_v41 = vunpack.c.l.s4 %v251_v40 }
   0x9   :  { %v61_v25 = vadd.f32 %v52_v20, %v24_v11  ;;  %v108_v44 = vshrl.u32 %v107_v42, 7  ;;  %vm145_vm4 = vcmask 1041408   ;;  %p245_p2 = pnand %p243_p1, %p240_p0 }
   0xa   :  { %v64_v26 = vadd.f32 %v62_v18, %v55_v22  ;;  %v66_v27 = vmul.f32 %v60_v23, %v60_v23  ;;  %v65_v28 = vadd.f32 %v63_v21, %v56_v24  ;;  %v106_v43 = vunpack.c.0.s8 %v105_v41 }
   0xb   :  { %v67_v29 = vmul.f32 %v61_v25, %v61_v25 }
   0xc   :  { %v68_v30 = vmul.f32 0.25, %v66_v27  ;;  %v109_v47 = vsub.s32 %v106_v43, %v108_v44 }
   0xd   :  { %v69_v31 = vmul.f32 0.25, %v67_v29 }
   0xe   :  { %v70_v32 = vsub.f32 %v64_v26, %v68_v30 }
   0xf   :  { %v71_v33 = vsub.f32 %v65_v28, %v69_v31 }
  0x10   :  { %v72_v34 = vmul.f32 0.33333334, %v70_v32 }
  0x11   :  { %v73_v35 = vmul.f32 0.33333334, %v71_v33 }
  0x12   :  { %v74_v36 = vmax.f32 %v72_v34, 0.0 }
  0x13   :  { %v75_v37 = vmax.f32 %v73_v35, 0.0 }
  0x14   :  { %v76_v38 = vadd.f32 1e-08, %v74_v36 }
  0x15   :  { %v77_v39 = vadd.f32 1e-08, %v75_v37 }
  0x16   :  { %235 = vrsqrt.f32 %v76_v38  ;;  %vm80_vm0 = vcmp.eq.f32.partialorder %v76_v38, inf  ;;  %v83_v46 = vand.u32 2147483648, %v76_v38  ;;  %vm82_vm1 = vcmp.eq.f32.partialorder %v76_v38, 0.0 }
  0x17   :  { %237 = vrsqrt.f32 %v77_v39  ;;  %vm87_vm2 = vcmp.eq.f32.partialorder %v77_v39, inf  ;;  %v90_v50 = vand.u32 2147483648, %v77_v39  ;;  %vm89_vm3 = vcmp.eq.f32.partialorder %v77_v39, 0.0 }
  0x20   :  { %v236_v45 = vpop.eup %235 }
  0x21   :  { %v238_v48 = vpop.eup %237  ;;  %v79_v49 = vmul.f32 %v236_v45, %v76_v38 }
  0x22   :  { %v86_v51 = vmul.f32 %v238_v48, %v77_v39 }
  0x23   :  { %v81_v52 = vsel %vm80_vm0, %v76_v38, %v79_v49 }
  0x24   :  { %v84_v53 = vsel %vm82_vm1, %v83_v46, %v81_v52  ;;  %v88_v54 = vsel %vm87_vm2, %v77_v39, %v86_v51 }
  0x25   :  { %v91_v55 = vsel %vm89_vm3, %v90_v50, %v88_v54  ;;  %v103_v56 = vcombine.high %v84_v53, %v84_v53  ;;  %v110_v57 = vrot.slane %v84_v53, %v109_v47 }
  0x26   :  { %v120_v58 = vcombine.high %v91_v55, %v91_v55  ;;  %v127_v61 = vrot.slane %v91_v55, %v109_v47 }
  0x27   :  { %v117_v59 = vrot.slane %v103_v56, %v109_v47  ;;  %v118_v60 = vcombine.high %v110_v57, %v110_v57  ;;  %v146_v62 = vsel %vm145_vm4, %v110_v57, 0.0 }
  0x28   :  { %v134_v3 = vrot.slane %v120_v58, %v109_v47  ;;  %v135_v4 = vcombine.high %v127_v61, %v127_v61  ;;  %v153_v7 = vsel %vm145_vm4, %v127_v61, 0.0 }
  0x29   :  { %v119_v63 = vcombine.high %v117_v59, %v117_v59  ;;  %v147_v0 = vsel %vm145_vm4, %v118_v60, 0.0  ;;  %v149_v1 = vsel %vm145_vm4, %v117_v59, 0.0 }
  0x2a   :  { %v148_v2 = vadd.f32 %v147_v0, %v146_v62  ;;  %v136_v9 = vcombine.high %v134_v3, %v134_v3  ;;  %v155_v10 = vsel %vm145_vm4, %v135_v4, 0.0  ;;  %v157_v12 = vsel %vm145_vm4, %v134_v3, 0.0 }
  0x2b   :  { %v151_v5 = vsel %vm145_vm4, %v119_v63, 0.0 }
  0x2c   :  { %v150_v6 = vadd.f32 %v149_v1, %v148_v2  ;;  %v159_v14 = vsel %vm145_vm4, %v136_v9, 0.0 }
  0x2e   :  { %v152_v8 = vadd.f32 %v151_v5, %v150_v6 }
  0x30   :  { %v154_v11 = vadd.f32 %v153_v7, %v152_v8 }
  0x32   :  { %v156_v13 = vadd.f32 %v155_v10, %v154_v11 }
  0x34   :  { %v158_v15 = vadd.f32 %v157_v12, %v156_v13 }
  0x36   :  { %v160_v16 = vadd.f32 %v159_v14, %v158_v15 }
  0x38   :  { %161 = vadd.xlane.f32.xlu0 %v160_v16 }
  0xc5   :  { %v162_v17 = vpop.xlane.xlu0 %161 }
  0xc6   :  { %v163_v18 = vrot.slane %v162_v17, 4 }
  0xc8   :  { %v164_v19 = vadd.f32 %v163_v18, %v162_v17 }
  0xca   :  { %v165_v20 = vrot.slane %v164_v19, 2 }
  0xcc   :  { %v166_v21 = vadd.f32 %v165_v20, %v164_v19 }
  0xce   :  { %v167_v22 = vrot.slane %v166_v21, 1 }
  0xd0   :  { %v168_v23 = vadd.f32 %v167_v22, %v166_v21 }
  0xd2   :  { %231 = vpush %v168_v23 }
 0x103   :  { %s232_s1 = spop %231 }
 0x104   :  { %s170_s12 = smul.f32 0.00048828125, %s232_s1 }
 0x106   :  { %172 = sst [smem:[#allocation4]] %s170_s12 }
 0x107   :  { %248 = shalt.err (!%p245_p2)
}
 0x108   :  { %s252_s20 = smov [#allocation4]  }
 0x109   :  { %213 = dma.smem_to_hbm %s252_s20, 16, %s338_s2, [#allocation5]  }
 0x10a   :  { %249 = dma.done.wait [#allocation5], 16  }
 0x10b   :  { %250 = vsyncadd [#allocation5], 4294967280 }
 0x10c   :  { %219 = sfence }
 0x10d   :  { %220 = vsyncpa [#allocation5], 1 }

</bundles_post_ra>
